<compile_context>
chip_gen: v7x
topology: tpu7x:2x2x1
jax: 0.10.0
libtpu: 0.0.40
codegen_flags: <defaults>
</compile_context>

<pallas_src>
import jax
import jax.numpy as jnp
from jax import lax
from jax.experimental import pallas as pl
from jax.experimental.pallas import tpu as pltpu

EPS = 1e-12  # torch F.normalize default eps


def _round_up(x: int, m: int) -> int:
    return ((x + m - 1) // m) * m


def _l2_normalize_kernel(x_ref, o_ref):
    # x_ref / o_ref: (TR, H) VMEM tiles of flattened rows.
    x = x_ref[...].astype(jnp.float32)
    sq = jnp.sum(x * x, axis=-1, keepdims=True)               # (TR, 1)
    # max(sqrt(sq), EPS) == sqrt(max(sq, EPS^2)); rsqrt runs on the EUP, and
    # the per-element divide becomes a broadcast multiply on the VPU.
    inv = lax.rsqrt(jnp.maximum(sq, jnp.float32(EPS * EPS)))   # (TR, 1)
    o_ref[...] = (x * inv).astype(o_ref.dtype)


def normalize_table_embeds(table_embeds: jax.Array) -> jax.Array:
    """L2-normalize rows of each per-batch embedding matrix.

    table_embeds: (B, R, H) float array.
    Returns same shape/dtype with each row divided by max(||row||_2, 1e-12).
    """
    B, R, H = table_embeds.shape
    dtype = table_embeds.dtype
    itemsize = jnp.dtype(dtype).itemsize

    # Flatten (B, R) -> one row axis; normalization is purely per-row.
    N = B * R
    x2d = table_embeds.reshape(N, H)

    # Sublane packing: 8 rows/vreg for 32-bit dtypes, 16 for 16-bit dtypes.
    sublane = 16 if itemsize == 2 else 8

    # Target ~2 MiB per block buffer (lane-dense: the full H stays last).
    target_bytes = 2 * 1024 * 1024
    target_rows = max(sublane, target_bytes // max(1, H * itemsize))
    TR = min(_round_up(N, sublane), _round_up(target_rows, sublane))
    TR = max(sublane, (TR // sublane) * sublane)

    # Pad rows to a multiple of TR; padded zero rows normalize to 0 (safe).
    N_pad = _round_up(N, TR)
    if N_pad != N:
        x2d = jnp.pad(x2d, ((0, N_pad - N), (0, 0)))

    grid = (N_pad // TR,)

    # VMEM budget: in + out, double-buffered -> ~4 * TR * H * itemsize, plus
    # headroom.  Cap at 32 MiB (default scoped limit on v6e/v7x; >= v5e's 16).
    block_bytes = TR * H * itemsize
    vmem_limit = min(max(6 * block_bytes, 16 * 1024 * 1024), 32 * 1024 * 1024)

    cost = pl.CostEstimate(
        flops=3 * N * H,              # square + reduce-add + scale
        transcendentals=N,            # one rsqrt per row
        bytes_accessed=2 * N * H * itemsize,
    )

    out2d = pl.pallas_call(
        _l2_normalize_kernel,
        out_shape=jax.ShapeDtypeStruct((N_pad, H), dtype),
        grid_spec=pl.GridSpec(
            grid=grid,
            in_specs=[pl.BlockSpec((TR, H), lambda i: (i, 0))],
            out_specs=pl.BlockSpec((TR, H), lambda i: (i, 0)),
        ),
        compiler_params=pltpu.CompilerParams(
            dimension_semantics=("parallel",),
            vmem_limit_bytes=vmem_limit,
        ),
        cost_estimate=cost,
    )(x2d)

    if N_pad != N:
        out2d = out2d[:N]
    return out2d.reshape(B, R, H)


def model_forward(input_ids: jax.Array, table_embeds_raw: jax.Array) -> jax.Array:
    """Mirrors Model.forward's own compute: build the normalized table_embeds
    for each batch element (F.normalize of each per-batch (R, H) matrix).
    """
    # TODO(synk): decoder.forward (TableDecoder LLM) has no in-module definition;
    # only the table-embedding normalization hot path is implemented here.
    bs = input_ids.shape[0]
    assert table_embeds_raw.shape[0] == bs
    return normalize_table_embeds(table_embeds_raw)


if __name__ == "__main__":
    key = jax.random.PRNGKey(0)
    k1, k2 = jax.random.split(key)

    # Small, config-consistent shapes: encoder_hidden_size=384 (from MyConfig),
    # batch=2, 8 table rows per db, seq_len=8 token ids.
    B, R, H = 2, 8, 384
    SEQ = 8

    input_ids = jax.random.randint(k1, (B, SEQ), 0, 32000, dtype=jnp.int32)
    # Deterministic synthetic "db embeddings" (stand-in for the .npy files).
    table_embeds_raw = jax.random.normal(k2, (B, R, H), dtype=jnp.float32)

    fwd = jax.jit(model_forward)
    out = fwd(input_ids, table_embeds_raw)
    out = jax.block_until_ready(out)

    # Reference check against plain-JAX F.normalize semantics.
    norm = jnp.sqrt(jnp.sum(table_embeds_raw ** 2, axis=-1, keepdims=True))
    ref = table_embeds_raw / jnp.maximum(norm, EPS)
    assert out.shape == (B, R, H)
    assert out.dtype == table_embeds_raw.dtype
    assert jnp.allclose(out, ref, atol=1e-5, rtol=1e-5)

    print("KERNEL_OK")
</pallas_src>

<mosaic_0001>
module attributes {stable_mosaic.version = 11 : i64} {
  func.func @_l2_normalize_kernel(%arg0: i32, %arg1: memref<16x384xf32, #tpu.memory_space<vmem>>, %arg2: memref<16x384xf32, #tpu.memory_space<vmem>>) attributes {dimension_semantics = [#tpu.dimension_semantics<parallel>], iteration_bounds = array<i64: 1>, scalar_prefetch = 0 : i64, scratch_operands = 0 : i64, tpu.core_type = #tpu.core_type<tc>, window_params = [{transform_indices = @transform_0, window_bounds = array<i64: 16, 384>}, {transform_indices = @transform_1, window_bounds = array<i64: 16, 384>}]} {
    %c0 = arith.constant 0 : index
    %c0_0 = arith.constant 0 : index
    %0 = vector.load %arg1[%c0, %c0_0] : memref<16x384xf32, #tpu.memory_space<vmem>>, vector<16x384xf32>
    %1 = arith.mulf %0, %0 : vector<16x384xf32>
    %cst = arith.constant dense<0.000000e+00> : vector<16xf32>
    %2 = vector.multi_reduction <add>, %1, %cst [1] : vector<16x384xf32> to vector<16xf32>
    %3 = vector.shape_cast %2 : vector<16xf32> to vector<16x1xf32>
    %cst_1 = arith.constant 1.000000e-24 : f32
    %4 = vector.broadcast %cst_1 : f32 to vector<16x1xf32>
    %5 = arith.maximumf %3, %4 : vector<16x1xf32>
    %6 = math.rsqrt %5 : vector<16x1xf32>
    %7 = vector.broadcast %6 : vector<16x1xf32> to vector<16x384xf32>
    %8 = arith.mulf %0, %7 : vector<16x384xf32>
    %c0_2 = arith.constant 0 : index
    %c0_3 = arith.constant 0 : index
    %9 = vector.load %arg2[%c0_2, %c0_3] : memref<16x384xf32, #tpu.memory_space<vmem>>, vector<16x384xf32>
    tpu.vector_store %arg2[%c0_2, %c0_3], %8 {strides = array<i32>} : memref<16x384xf32, #tpu.memory_space<vmem>>, vector<16x384xf32>,
    return
  }
  func.func @transform_0(%arg0: i32) -> (i32, i32) {
    %c0_i32 = arith.constant 0 : i32
    %c0_i32_0 = arith.constant 0 : i32
    return %arg0, %c0_i32 : i32, i32
  }
  func.func @transform_1(%arg0: i32) -> (i32, i32) {
    %c0_i32 = arith.constant 0 : i32
    %c0_i32_0 = arith.constant 0 : i32
    return %arg0, %c0_i32 : i32, i32
  }
}

</mosaic_0001>

<bundles_post_ra>
// kernel: model_forward.1
= control target key start
LH: loop header
LB: loop body
LE: loop exit
PB: predicated region body
PF: predicated region fallthrough
CT: control target
= control target key end

     0   :  { %6 = vsyncpa [#allocation3], 0  ;;  %s176_s0 = inlined_call_operand.hbm [shape: f32[16,384], index: 0, kind: input, shape index: {}]   ;;  %s177_s1 = inlined_call_operand.hbm [shape: f32[16,384], index: 1, kind: output, shape index: {}]  }
   0x1   :  { %7 = vsyncpa [#allocation4], 0  ;;  %s132_s6 = smov [#allocation2]   ;;  %s84_s10 = scalar_lea.hbm %s176_s0, 768 }
   0x2   :  { %s13_s7 = sshll.u32 %s132_s6, 4  ;;  %p85_p0 = scmp.ne.s32.totalorder %s176_s0, %s84_s10  ;;  %s14_s7 = int_to_ptr.vmem [resolvable:$true] %s13_s7 }
   0x3   :  { %p88_p1 = scmp.lt.u32.totalorder %s84_s10, %s176_s0 }
   0x5   :  { %p90_p2 = pnand %p88_p1, %p85_p0 }
   0x7   :  { %93 = shalt.err (!%p90_p2)
}
   0x8   :  { %s94_s15 = scalar_lea.vmem %s14_s7, 768  ;;  %p99_p4 = scmp.lt.s32.totalorder %s14_s7, %s14_s7 }
   0x9   :  { %p95_p3 = scmp.ne.s32.totalorder %s14_s7, %s94_s15  ;;  %p100_p5 = scmp.lt.s32.totalorder %s94_s15, %s94_s15 }
   0xb   :  { %p101_p6 = por %p100_p5, %p99_p4 }
   0xd   :  { %p102_p7 = pnand %p101_p6, %p95_p3 }
   0xf   :  { %105 = shalt.err (!%p102_p7)
}
  0x10   :  { %s133_s16 = smov 384   ;;  %s134_s17 = smov 24  }
  0x11   :  { %19 = dma.hbm_to_vmem [thread:$0]  %s176_s0, 768, %s14_s7, [#allocation3], %s133_s16, %s133_s16, %s134_s17  }
  0x12   :  { %128 = dma.done.wait [#allocation3], 768  }
  0x13   :  { %129 = vsyncadd [#allocation3], 4294966528  ;;  %v23_v0 = vld [vmem:[#allocation2] sm:$0xff]  ;;  %v24_v1 = vld [vmem:[#allocation2 + $0x8] sm:$0xff]  ;;  %s135_s0 = smov [#allocation5]  }
  0x14   :  { %v25_v2 = vld [vmem:[#allocation2 + $0x10] sm:$0xff]  ;;  %v29_v3 = vmul.f32 %v23_v0, %v23_v0  ;;  %v30_v4 = vmul.f32 %v24_v1, %v24_v1  ;;  %v26_v6 = vld [vmem:[#allocation2 + $0x18] sm:$0xff]  ;;  %v27_v7 = vld [vmem:[#allocation2 + $0x20] sm:$0xff]  ;;  %s64_s20 = sshll.u32 %s135_s0, 4  ;;  %s65_s20 = int_to_ptr.vmem [resolvable:$true] %s64_s20 }
  0x15   :  { %v31_v5 = vmul.f32 %v25_v2, %v25_v2  ;;  %v28_v8 = vld [vmem:[#allocation2 + $0x28] sm:$0xff]  ;;  %v32_v9 = vmul.f32 %v26_v6, %v26_v6  ;;  %v33_v10 = vmul.f32 %v27_v7, %v27_v7  ;;  %s106_s21 = scalar_lea.vmem %s65_s20, 768  ;;  %p111_p9 = scmp.lt.s32.totalorder %s65_s20, %s65_s20 }
  0x16   :  { %v35_v11 = vadd.f32 %v30_v4, %v29_v3  ;;  %v34_v12 = vmul.f32 %v28_v8, %v28_v8  ;;  %p107_p8 = scmp.ne.s32.totalorder %s65_s20, %s106_s21  ;;  %p112_p10 = scmp.lt.s32.totalorder %s106_s21, %s106_s21 }
  0x17   :  { %v39_v13 = vadd.f32 %v33_v10, %v32_v9 }
  0x18   :  { %v36_v14 = vadd.f32 %v35_v11, %v31_v5  ;;  %p113_p11 = por %p112_p10, %p111_p9 }
  0x19   :  { %v40_v15 = vadd.f32 %v39_v13, %v34_v12 }
  0x1a   :  { %37 = vadd.xlane.f32.xlu0 %v36_v14  ;;  %p114_p12 = pnand %p113_p11, %p107_p8 }
  0x1e   :  { %41 = vadd.xlane.f32.xlu0 %v40_v15 }
  0xa7   :  { %v38_v16 = vpop.xlane.xlu0 %37 }
  0xa8   :  { %v43_v17 = vmax.f32 %v38_v16, 1e-24 }
  0xaa   :  { %80 = vrsqrt.f32 %v43_v17 }
  0xab   :  { %v42_v18 = vpop.xlane.xlu0 %41 }
  0xac   :  { %v44_v19 = vmax.f32 %v42_v18, 1e-24 }
  0xae   :  { %82 = vrsqrt.f32 %v44_v19 }
  0xb4   :  { %v81_v20 = vpop.eup %80 }
  0xb5   :  { %v47_v21 = vmul.f32 %v81_v20, %v23_v0  ;;  %v48_v22 = vmul.f32 %v81_v20, %v24_v1  ;;  %v49_v23 = vmul.f32 %v81_v20, %v25_v2 }
  0xb7   :  { %53 = vst [vmem:[#allocation5] sm:$0xff] %v47_v21  ;;  %54 = vst [vmem:[#allocation5 + $0x8] sm:$0xff] %v48_v22 }
  0xb8   :  { %55 = vst [vmem:[#allocation5 + $0x10] sm:$0xff] %v49_v23  ;;  %v83_v24 = vpop.eup %82 }
  0xb9   :  { %v50_v25 = vmul.f32 %v83_v24, %v26_v6  ;;  %v51_v26 = vmul.f32 %v83_v24, %v27_v7  ;;  %v52_v27 = vmul.f32 %v83_v24, %v28_v8 }
  0xbb   :  { %56 = vst [vmem:[#allocation5 + $0x18] sm:$0xff] %v50_v25  ;;  %57 = vst [vmem:[#allocation5 + $0x20] sm:$0xff] %v51_v26 }
  0xbc   :  { %58 = vst [vmem:[#allocation5 + $0x28] sm:$0xff] %v52_v27 }
  0xbd   :  { %117 = shalt.err (!%p114_p12)
}
  0xbe   :  { %s118_s24 = scalar_lea.hbm %s177_s1, 768 }
  0xbf   :  { %p119_p13 = scmp.ne.s32.totalorder %s177_s1, %s118_s24  ;;  %p122_p0 = scmp.lt.u32.totalorder %s118_s24, %s177_s1 }
  0xc1   :  { %p124_p1 = pnand %p122_p0, %p119_p13 }
  0xc3   :  { %127 = shalt.err (!%p124_p1)
}
  0xc4   :  { %70 = dma.vmem_to_hbm [thread:$0]  %s65_s20, 768, %s177_s1, [#allocation4], %s133_s16, %s133_s16, %s134_s17  }
  0xc5   :  { %130 = dma.done.wait [#allocation4], 768  }
  0xc6   :  { %131 = vsyncadd [#allocation4], 4294966528 }
  0xc7   :  { %74 = vsyncpa [#allocation3], 1 }
  0xc8   :  { %75 = vsyncpa [#allocation4], 1 }

</bundles_post_ra>
